<compile_context>
chip_gen: v7x
topology: tpu7x:2x2x1
jax: 0.10.0
libtpu: 0.0.40
codegen_flags: <defaults>
</compile_context>

<pallas_src>
import jax
import jax.numpy as jnp
import numpy as np
from jax.experimental import pallas as pl
from jax.experimental.pallas import tpu as pltpu

LANES = 128       # lane-dense width used for all padded tiles
SUBLANES = 8      # f32 sublane extent (batch padding)
ROW_ALIGN = 16    # bf16 packs 2 rows per 32-bit sublane -> align weight sections


def _align(n, m):
    return ((n + m - 1) // m) * m


def lstm_mlp_kernel(x_ref, w_ref, b_ref, o_ref):
    """LSTM recurrence + output MLP, whole problem resident in VMEM.

    x_ref: (T, B, I)  f32, time-major, batch padded to a multiple of 8.
    w_ref: (R, 128)   bf16 packed weights (16-row-aligned sections):
             rows [0, I)             : w_ih^T   (I, 4H)
             rows [o_hh, o_hh+H)     : w_hh^T   (H, 4H)
             rows [o_w1, o_w1+H)     : w1^T padded to 128 lanes
             rows [o_w2, o_w2+128)   : w2 padded to (128, 128)
    b_ref: (3, 128)   f32: row0 = b_ih + b_hh, row1 = b1 (padded), row2 = b2 (padded).
    o_ref: (B, 128)   f32: lane 0 carries the Linear(H, 1) output.
    """
    T, B, I = x_ref.shape
    G = w_ref.shape[1]          # 4 * H == 128 (lane-dense)
    H = G // 4

    o_hh = _align(I, ROW_ALIGN)
    o_w1 = o_hh + H
    o_w2 = o_w1 + H

    w_ih = w_ref[0:I, :]               # (I, 4H)    bf16
    w_hh = w_ref[o_hh:o_hh + H, :]     # (H, 4H)    bf16
    w1 = w_ref[o_w1:o_w1 + H, :]       # (H, 128)   bf16 (lanes >= H are zero)
    w2 = w_ref[o_w2:o_w2 + G, :]       # (128, 128) bf16 (only [0:H, 0] nonzero)

    b_lstm = b_ref[0:1, :]             # (1, 4H)  f32, fused b_ih + b_hh
    b1 = b_ref[1:2, :]                 # (1, 128) f32
    b2 = b_ref[2:3, :]                 # (1, 128) f32

    # Hoisted input projection: one (T*B, I) @ (I, 4H) matmul off the serial
    # path; bias folded in.  Time-major, so gx[t*B:(t+1)*B] is a whole tile.
    x_all = x_ref[...].reshape(T * B, I).astype(jnp.bfloat16)
    gx = jnp.dot(x_all, w_ih, preferred_element_type=jnp.float32) + b_lstm  # (T*B, 4H)

    h = jnp.zeros((B, H), jnp.float32)
    c = jnp.zeros((B, H), jnp.float32)

    # Recurrence, statically unrolled (T small & fixed).  Per-step serial work:
    # one bf16 (B, H) @ (H, 4H) MXU matmul + whole-vreg f32 EUP activations.
    for t in range(T):
        gates = gx[t * B:(t + 1) * B, :] + jnp.dot(
            h.astype(jnp.bfloat16), w_hh, preferred_element_type=jnp.float32)
        sig = jax.nn.sigmoid(gates)        # 2 whole-(B,4H) EUP passes, slice after
        th = jnp.tanh(gates)
        i_g = sig[:, 0:H]                  # input gate
        f_g = sig[:, H:2 * H]              # forget gate
        g_g = th[:, 2 * H:3 * H]           # cell candidate
        o_g = sig[:, 3 * H:4 * H]          # output gate
        c = f_g * c + i_g * g_g
        h = o_g * jnp.tanh(c)

    # Output MLP: Linear(H,H) -> ReLU -> Linear(H,1), lane-dense 128 columns
    # end to end (padding is absorbed exactly by ReLU(0)=0 and zero w2 rows).
    z = jnp.maximum(
        jnp.dot(h.astype(jnp.bfloat16), w1, preferred_element_type=jnp.float32) + b1,
        0.0)                                                        # (B, 128)
    out = jnp.dot(z.astype(jnp.bfloat16), w2,
                  preferred_element_type=jnp.float32) + b2          # (B, 128)
    o_ref[...] = out.astype(o_ref.dtype)


def timeseries_forward(x_bti, params):
    """x_bti: (B, T, I) f32 (PyTorch batch_first layout) -> (B, 1) f32."""
    B, T, I = x_bti.shape
    Bp = _align(B, SUBLANES)

    # Pad batch to full sublanes and go time-major once, outside the kernel
    # (tiny XLA relayout on ~1 KB; removes per-step sublane gathers inside).
    x_pad = jnp.zeros((Bp, T, I), x_bti.dtype).at[:B].set(x_bti)
    x_tbi = jnp.transpose(x_pad, (1, 0, 2))          # (T, Bp, I)

    vmem = pl.BlockSpec(memory_space=pltpu.MemorySpace.VMEM)
    out_padded = pl.pallas_call(
        lstm_mlp_kernel,
        out_shape=jax.ShapeDtypeStruct((Bp, LANES), jnp.float32),
        in_specs=[vmem, vmem, vmem],
        out_specs=vmem,
    )(x_tbi, params["w_packed"], params["b_packed"])

    # Lane 0 holds the real Linear(H,1) result; rows >= B are batch padding.
    return out_padded[:B, :1]


def make_params(key, input_size, hidden_size):
    """Deterministic synthetic parameters mimicking PyTorch's uniform init."""
    I, H = input_size, hidden_size
    G = 4 * H
    assert G == LANES, "packing below assumes 4*hidden == 128 lanes"
    assert H % ROW_ALIGN == 0

    ks = jax.random.split(key, 8)
    bound = 1.0 / np.sqrt(H)

    def u(k, shape):
        return jax.random.uniform(k, shape, jnp.float32, -bound, bound)

    # PyTorch layouts: weight_ih (4H, I), weight_hh (4H, H); gate order i, f, g, o.
    w_ih = u(ks[0], (G, I))
    w_hh = u(ks[1], (G, H))
    b_ih = u(ks[2], (G,))
    b_hh = u(ks[3], (G,))
    w1 = u(ks[4], (H, H))       # Linear(H, H)
    b1 = u(ks[5], (H,))
    w2 = u(ks[6], (1, H))       # Linear(H, 1)
    b2 = u(ks[7], (1,))

    # Lane-pad the output MLP to 128 columns end-to-end.
    w1_pad = jnp.zeros((H, LANES), jnp.float32).at[:, :H].set(w1.T)
    w2_pad = jnp.zeros((LANES, LANES), jnp.float32).at[:H, 0].set(w2[0, :])
    b1_pad = jnp.zeros((LANES,), jnp.float32).at[:H].set(b1)
    b2_pad = jnp.zeros((LANES,), jnp.float32).at[0].set(b2[0])

    # Coalesced kernel inputs: one bf16 matmul-weight buffer + one f32 bias buffer.
    o_hh = _align(I, ROW_ALIGN)
    w_packed = jnp.zeros((o_hh + 2 * H + LANES, LANES), jnp.float32)
    w_packed = w_packed.at[0:I, :].set(w_ih.T)
    w_packed = w_packed.at[o_hh:o_hh + H, :].set(w_hh.T)
    w_packed = w_packed.at[o_hh + H:o_hh + 2 * H, :].set(w1_pad)
    w_packed = w_packed.at[o_hh + 2 * H:, :].set(w2_pad)
    w_packed = w_packed.astype(jnp.bfloat16)

    b_packed = jnp.stack([b_ih + b_hh, b1_pad, b2_pad], axis=0)   # (3, 128) f32

    return {
        "w_packed": w_packed,
        "b_packed": b_packed,
        # f32 originals for the pure-JAX reference paths.
        "w_ih_t": w_ih.T, "w_hh_t": w_hh.T, "b": (b_ih + b_hh).reshape(1, -1),
        "w1_t": w1.T, "b1": b1.reshape(1, -1), "w2_t": w2.T, "b2": b2.reshape(1, -1),
    }


def reference_forward(x_bti, params, matmul_dtype=jnp.float32):
    """Pure-JAX reference of the same math.  matmul_dtype=bfloat16 mirrors the
    kernel's MXU operand dtype (f32 accumulation); float32 is the exact path."""
    B, T, I = x_bti.shape
    H = params["w_hh_t"].shape[0]
    cast = lambda a: a.astype(matmul_dtype)
    w_ih, w_hh = cast(params["w_ih_t"]), cast(params["w_hh_t"])
    w1, w2 = cast(params["w1_t"]), cast(params["w2_t"])
    dot = lambda a, b: jnp.dot(cast(a), b, preferred_element_type=jnp.float32)

    h = jnp.zeros((B, H), jnp.float32)
    c = jnp.zeros((B, H), jnp.float32)
    for t in range(T):
        gates = dot(x_bti[:, t, :], w_ih) + dot(h, w_hh) + params["b"]
        i = jax.nn.sigmoid(gates[:, 0:H])
        f = jax.nn.sigmoid(gates[:, H:2 * H])
        g = jnp.tanh(gates[:, 2 * H:3 * H])
        o = jax.nn.sigmoid(gates[:, 3 * H:4 * H])
        c = f * c + i * g
        h = o * jnp.tanh(c)
    z = jnp.maximum(dot(h, w1) + params["b1"], 0.0)
    return dot(z, w2) + params["b2"]


if __name__ == "__main__":
    B, T, I, H = 2, 8, 4, 32   # batch, seq_len, input_size, hidden_size

    key = jax.random.PRNGKey(0)
    kx, kp = jax.random.split(key)
    x = jax.random.normal(kx, (B, T, I), jnp.float32)
    params = make_params(kp, I, H)

    out = jax.block_until_ready(timeseries_forward(x, params))
    assert out.shape == (B, 1)

    # Tight check vs a reference mirroring the kernel's bf16 MXU operands
    # (f32 accumulation), plus a loose sanity check vs the exact f32 math
    # (drift here is only the bf16 weight cast).
    ref_bf16 = reference_forward(x, params, jnp.bfloat16)
    np.testing.assert_allclose(np.asarray(out), np.asarray(ref_bf16),
                               rtol=1e-3, atol=1e-3)
    ref_f32 = reference_forward(x, params, jnp.float32)
    np.testing.assert_allclose(np.asarray(out), np.asarray(ref_f32),
                               rtol=0.15, atol=0.15)

    print("KERNEL_OK")
</pallas_src>

<mosaic_0001>
module attributes {stable_mosaic.version = 11 : i64} {
  func.func @lstm_mlp_kernel(%arg0: memref<8x8x4xf32, #tpu.memory_space<vmem>>, %arg1: memref<208x128xbf16, #tpu.memory_space<vmem>>, %arg2: memref<3x128xf32, #tpu.memory_space<vmem>>, %arg3: memref<8x128xf32, #tpu.memory_space<vmem>>) attributes {dimension_semantics = [], scalar_prefetch = 0 : i64, scratch_operands = 0 : i64, tpu.core_type = #tpu.core_type<tc>} {
    %c0 = arith.constant 0 : index
    %c0_0 = arith.constant 0 : index
    %0 = vector.load %arg1[%c0, %c0_0] : memref<208x128xbf16, #tpu.memory_space<vmem>>, vector<4x128xbf16>
    %c16 = arith.constant 16 : index
    %c0_1 = arith.constant 0 : index
    %1 = vector.load %arg1[%c16, %c0_1] : memref<208x128xbf16, #tpu.memory_space<vmem>>, vector<32x128xbf16>
    %c48 = arith.constant 48 : index
    %c0_2 = arith.constant 0 : index
    %2 = vector.load %arg1[%c48, %c0_2] : memref<208x128xbf16, #tpu.memory_space<vmem>>, vector<32x128xbf16>
    %c80 = arith.constant 80 : index
    %c0_3 = arith.constant 0 : index
    %3 = vector.load %arg1[%c80, %c0_3] : memref<208x128xbf16, #tpu.memory_space<vmem>>, vector<128x128xbf16>
    %c0_4 = arith.constant 0 : index
    %c0_5 = arith.constant 0 : index
    %4 = vector.load %arg2[%c0_4, %c0_5] : memref<3x128xf32, #tpu.memory_space<vmem>>, vector<1x128xf32>
    %c1 = arith.constant 1 : index
    %c0_6 = arith.constant 0 : index
    %5 = vector.load %arg2[%c1, %c0_6] : memref<3x128xf32, #tpu.memory_space<vmem>>, vector<1x128xf32>
    %c2 = arith.constant 2 : index
    %c0_7 = arith.constant 0 : index
    %6 = vector.load %arg2[%c2, %c0_7] : memref<3x128xf32, #tpu.memory_space<vmem>>, vector<1x128xf32>
    %c0_8 = arith.constant 0 : index
    %c0_9 = arith.constant 0 : index
    %c0_10 = arith.constant 0 : index
    %7 = vector.load %arg0[%c0_8, %c0_9, %c0_10] : memref<8x8x4xf32, #tpu.memory_space<vmem>>, vector<8x8x4xf32>
    %8 = vector.shape_cast %7 : vector<8x8x4xf32> to vector<64x4xf32>
    %9 = arith.truncf %8 : vector<64x4xf32> to vector<64x4xbf16>
    %cst = arith.constant dense<0.000000e+00> : vector<64x128xf32>
    %10 = tpu.matmul %9, %0, %cst {dimension_numbers = #tpu.dot_dimension_numbers<[1], [0], [0], [1], [0, 0, 1, 1], [], []>} : vector<64x4xbf16>, vector<4x128xbf16>, vector<64x128xf32> -> vector<64x128xf32>
    %11 = vector.broadcast %4 : vector<1x128xf32> to vector<64x128xf32>
    %12 = arith.addf %10, %11 : vector<64x128xf32>
    %cst_11 = arith.constant 0.000000e+00 : f32
    %13 = vector.broadcast %cst_11 : f32 to vector<8x32xf32>
    %cst_12 = arith.constant 0.000000e+00 : f32
    %14 = vector.broadcast %cst_12 : f32 to vector<8x32xf32>
    %15 = vector.extract_strided_slice %12 {offsets = [0, 0], sizes = [8, 128], strides = [1, 1]} : vector<64x128xf32> to vector<8x128xf32>
    %16 = arith.truncf %13 : vector<8x32xf32> to vector<8x32xbf16>
    %cst_13 = arith.constant dense<0.000000e+00> : vector<8x128xf32>
    %17 = tpu.matmul %16, %1, %cst_13 {dimension_numbers = #tpu.dot_dimension_numbers<[1], [0], [0], [1], [0, 0, 1, 1], [], []>} : vector<8x32xbf16>, vector<32x128xbf16>, vector<8x128xf32> -> vector<8x128xf32>
    %18 = arith.addf %15, %17 : vector<8x128xf32>
    %19 = arith.negf %18 : vector<8x128xf32>
    %20 = math.exp %19 : vector<8x128xf32>
    %cst_14 = arith.constant 1.000000e+00 : f32
    %21 = vector.broadcast %cst_14 : f32 to vector<8x128xf32>
    %22 = arith.addf %21, %20 : vector<8x128xf32>
    %23 = arith.divf %21, %22 : vector<8x128xf32>
    %24 = math.tanh %18 : vector<8x128xf32>
    %25 = vector.extract_strided_slice %23 {offsets = [0, 0], sizes = [8, 32], strides = [1, 1]} : vector<8x128xf32> to vector<8x32xf32>
    %26 = vector.extract_strided_slice %23 {offsets = [0, 32], sizes = [8, 32], strides = [1, 1]} : vector<8x128xf32> to vector<8x32xf32>
    %27 = vector.extract_strided_slice %24 {offsets = [0, 64], sizes = [8, 32], strides = [1, 1]} : vector<8x128xf32> to vector<8x32xf32>
    %28 = vector.extract_strided_slice %23 {offsets = [0, 96], sizes = [8, 32], strides = [1, 1]} : vector<8x128xf32> to vector<8x32xf32>
    %29 = arith.mulf %26, %14 : vector<8x32xf32>
    %30 = arith.mulf %25, %27 : vector<8x32xf32>
    %31 = arith.addf %29, %30 : vector<8x32xf32>
    %32 = math.tanh %31 : vector<8x32xf32>
    %33 = arith.mulf %28, %32 : vector<8x32xf32>
    %34 = vector.extract_strided_slice %12 {offsets = [8, 0], sizes = [8, 128], strides = [1, 1]} : vector<64x128xf32> to vector<8x128xf32>
    %35 = arith.truncf %33 : vector<8x32xf32> to vector<8x32xbf16>
    %cst_15 = arith.constant dense<0.000000e+00> : vector<8x128xf32>
    %36 = tpu.matmul %35, %1, %cst_15 {dimension_numbers = #tpu.dot_dimension_numbers<[1], [0], [0], [1], [0, 0, 1, 1], [], []>} : vector<8x32xbf16>, vector<32x128xbf16>, vector<8x128xf32> -> vector<8x128xf32>
    %37 = arith.addf %34, %36 : vector<8x128xf32>
    %38 = arith.negf %37 : vector<8x128xf32>
    %39 = math.exp %38 : vector<8x128xf32>
    %cst_16 = arith.constant 1.000000e+00 : f32
    %40 = vector.broadcast %cst_16 : f32 to vector<8x128xf32>
    %41 = arith.addf %40, %39 : vector<8x128xf32>
    %42 = arith.divf %40, %41 : vector<8x128xf32>
    %43 = math.tanh %37 : vector<8x128xf32>
    %44 = vector.extract_strided_slice %42 {offsets = [0, 0], sizes = [8, 32], strides = [1, 1]} : vector<8x128xf32> to vector<8x32xf32>
    %45 = vector.extract_strided_slice %42 {offsets = [0, 32], sizes = [8, 32], strides = [1, 1]} : vector<8x128xf32> to vector<8x32xf32>
    %46 = vector.extract_strided_slice %43 {offsets = [0, 64], sizes = [8, 32], strides = [1, 1]} : vector<8x128xf32> to vector<8x32xf32>
    %47 = vector.extract_strided_slice %42 {offsets = [0, 96], sizes = [8, 32], strides = [1, 1]} : vector<8x128xf32> to vector<8x32xf32>
    %48 = arith.mulf %45, %31 : vector<8x32xf32>
    %49 = arith.mulf %44, %46 : vector<8x32xf32>
    %50 = arith.addf %48, %49 : vector<8x32xf32>
    %51 = math.tanh %50 : vector<8x32xf32>
    %52 = arith.mulf %47, %51 : vector<8x32xf32>
    %53 = vector.extract_strided_slice %12 {offsets = [16, 0], sizes = [8, 128], strides = [1, 1]} : vector<64x128xf32> to vector<8x128xf32>
    %54 = arith.truncf %52 : vector<8x32xf32> to vector<8x32xbf16>
    %cst_17 = arith.constant dense<0.000000e+00> : vector<8x128xf32>
    %55 = tpu.matmul %54, %1, %cst_17 {dimension_numbers = #tpu.dot_dimension_numbers<[1], [0], [0], [1], [0, 0, 1, 1], [], []>} : vector<8x32xbf16>, vector<32x128xbf16>, vector<8x128xf32> -> vector<8x128xf32>
    %56 = arith.addf %53, %55 : vector<8x128xf32>
    %57 = arith.negf %56 : vector<8x128xf32>
    %58 = math.exp %57 : vector<8x128xf32>
    %cst_18 = arith.constant 1.000000e+00 : f32
    %59 = vector.broadcast %cst_18 : f32 to vector<8x128xf32>
    %60 = arith.addf %59, %58 : vector<8x128xf32>
    %61 = arith.divf %59, %60 : vector<8x128xf32>
    %62 = math.tanh %56 : vector<8x128xf32>
    %63 = vector.extract_strided_slice %61 {offsets = [0, 0], sizes = [8, 32], strides = [1, 1]} : vector<8x128xf32> to vector<8x32xf32>
    %64 = vector.extract_strided_slice %61 {offsets = [0, 32], sizes = [8, 32], strides = [1, 1]} : vector<8x128xf32> to vector<8x32xf32>
    %65 = vector.extract_strided_slice %62 {offsets = [0, 64], sizes = [8, 32], strides = [1, 1]} : vector<8x128xf32> to vector<8x32xf32>
    %66 = vector.extract_strided_slice %61 {offsets = [0, 96], sizes = [8, 32], strides = [1, 1]} : vector<8x128xf32> to vector<8x32xf32>
    %67 = arith.mulf %64, %50 : vector<8x32xf32>
    %68 = arith.mulf %63, %65 : vector<8x32xf32>
    %69 = arith.addf %67, %68 : vector<8x32xf32>
    %70 = math.tanh %69 : vector<8x32xf32>
    %71 = arith.mulf %66, %70 : vector<8x32xf32>
    %72 = vector.extract_strided_slice %12 {offsets = [24, 0], sizes = [8, 128], strides = [1, 1]} : vector<64x128xf32> to vector<8x128xf32>
    %73 = arith.truncf %71 : vector<8x32xf32> to vector<8x32xbf16>
    %cst_19 = arith.constant dense<0.000000e+00> : vector<8x128xf32>
    %74 = tpu.matmul %73, %1, %cst_19 {dimension_numbers = #tpu.dot_dimension_numbers<[1], [0], [0], [1], [0, 0, 1, 1], [], []>} : vector<8x32xbf16>, vector<32x128xbf16>, vector<8x128xf32> -> vector<8x128xf32>
    %75 = arith.addf %72, %74 : vector<8x128xf32>
    %76 = arith.negf %75 : vector<8x128xf32>
    %77 = math.exp %76 : vector<8x128xf32>
    %cst_20 = arith.constant 1.000000e+00 : f32
    %78 = vector.broadcast %cst_20 : f32 to vector<8x128xf32>
    %79 = arith.addf %78, %77 : vector<8x128xf32>
    %80 = arith.divf %78, %79 : vector<8x128xf32>
    %81 = math.tanh %75 : vector<8x128xf32>
    %82 = vector.extract_strided_slice %80 {offsets = [0, 0], sizes = [8, 32], strides = [1, 1]} : vector<8x128xf32> to vector<8x32xf32>
    %83 = vector.extract_strided_slice %80 {offsets = [0, 32], sizes = [8, 32], strides = [1, 1]} : vector<8x128xf32> to vector<8x32xf32>
    %84 = vector.extract_strided_slice %81 {offsets = [0, 64], sizes = [8, 32], strides = [1, 1]} : vector<8x128xf32> to vector<8x32xf32>
    %85 = vector.extract_strided_slice %80 {offsets = [0, 96], sizes = [8, 32], strides = [1, 1]} : vector<8x128xf32> to vector<8x32xf32>
    %86 = arith.mulf %83, %69 : vector<8x32xf32>
    %87 = arith.mulf %82, %84 : vector<8x32xf32>
    %88 = arith.addf %86, %87 : vector<8x32xf32>
    %89 = math.tanh %88 : vector<8x32xf32>
    %90 = arith.mulf %85, %89 : vector<8x32xf32>
    %91 = vector.extract_strided_slice %12 {offsets = [32, 0], sizes = [8, 128], strides = [1, 1]} : vector<64x128xf32> to vector<8x128xf32>
    %92 = arith.truncf %90 : vector<8x32xf32> to vector<8x32xbf16>
    %cst_21 = arith.constant dense<0.000000e+00> : vector<8x128xf32>
    %93 = tpu.matmul %92, %1, %cst_21 {dimension_numbers = #tpu.dot_dimension_numbers<[1], [0], [0], [1], [0, 0, 1, 1], [], []>} : vector<8x32xbf16>, vector<32x128xbf16>, vector<8x128xf32> -> vector<8x128xf32>
    %94 = arith.addf %91, %93 : vector<8x128xf32>
    %95 = arith.negf %94 : vector<8x128xf32>
    %96 = math.exp %95 : vector<8x128xf32>
    %cst_22 = arith.constant 1.000000e+00 : f32
    %97 = vector.broadcast %cst_22 : f32 to vector<8x128xf32>
    %98 = arith.addf %97, %96 : vector<8x128xf32>
    %99 = arith.divf %97, %98 : vector<8x128xf32>
    %100 = math.tanh %94 : vector<8x128xf32>
    %101 = vector.extract_strided_slice %99 {offsets = [0, 0], sizes = [8, 32], strides = [1, 1]} : vector<8x128xf32> to vector<8x32xf32>
    %102 = vector.extract_strided_slice %99 {offsets = [0, 32], sizes = [8, 32], strides = [1, 1]} : vector<8x128xf32> to vector<8x32xf32>
    %103 = vector.extract_strided_slice %100 {offsets = [0, 64], sizes = [8, 32], strides = [1, 1]} : vector<8x128xf32> to vector<8x32xf32>
    %104 = vector.extract_strided_slice %99 {offsets = [0, 96], sizes = [8, 32], strides = [1, 1]} : vector<8x128xf32> to vector<8x32xf32>
    %105 = arith.mulf %102, %88 : vector<8x32xf32>
    %106 = arith.mulf %101, %103 : vector<8x32xf32>
    %107 = arith.addf %105, %106 : vector<8x32xf32>
    %108 = math.tanh %107 : vector<8x32xf32>
    %109 = arith.mulf %104, %108 : vector<8x32xf32>
    %110 = vector.extract_strided_slice %12 {offsets = [40, 0], sizes = [8, 128], strides = [1, 1]} : vector<64x128xf32> to vector<8x128xf32>
    %111 = arith.truncf %109 : vector<8x32xf32> to vector<8x32xbf16>
    %cst_23 = arith.constant dense<0.000000e+00> : vector<8x128xf32>
    %112 = tpu.matmul %111, %1, %cst_23 {dimension_numbers = #tpu.dot_dimension_numbers<[1], [0], [0], [1], [0, 0, 1, 1], [], []>} : vector<8x32xbf16>, vector<32x128xbf16>, vector<8x128xf32> -> vector<8x128xf32>
    %113 = arith.addf %110, %112 : vector<8x128xf32>
    %114 = arith.negf %113 : vector<8x128xf32>
    %115 = math.exp %114 : vector<8x128xf32>
    %cst_24 = arith.constant 1.000000e+00 : f32
    %116 = vector.broadcast %cst_24 : f32 to vector<8x128xf32>
    %117 = arith.addf %116, %115 : vector<8x128xf32>
    %118 = arith.divf %116, %117 : vector<8x128xf32>
    %119 = math.tanh %113 : vector<8x128xf32>
    %120 = vector.extract_strided_slice %118 {offsets = [0, 0], sizes = [8, 32], strides = [1, 1]} : vector<8x128xf32> to vector<8x32xf32>
    %121 = vector.extract_strided_slice %118 {offsets = [0, 32], sizes = [8, 32], strides = [1, 1]} : vector<8x128xf32> to vector<8x32xf32>
    %122 = vector.extract_strided_slice %119 {offsets = [0, 64], sizes = [8, 32], strides = [1, 1]} : vector<8x128xf32> to vector<8x32xf32>
    %123 = vector.extract_strided_slice %118 {offsets = [0, 96], sizes = [8, 32], strides = [1, 1]} : vector<8x128xf32> to vector<8x32xf32>
    %124 = arith.mulf %121, %107 : vector<8x32xf32>
    %125 = arith.mulf %120, %122 : vector<8x32xf32>
    %126 = arith.addf %124, %125 : vector<8x32xf32>
    %127 = math.tanh %126 : vector<8x32xf32>
    %128 = arith.mulf %123, %127 : vector<8x32xf32>
    %129 = vector.extract_strided_slice %12 {offsets = [48, 0], sizes = [8, 128], strides = [1, 1]} : vector<64x128xf32> to vector<8x128xf32>
    %130 = arith.truncf %128 : vector<8x32xf32> to vector<8x32xbf16>
    %cst_25 = arith.constant dense<0.000000e+00> : vector<8x128xf32>
    %131 = tpu.matmul %130, %1, %cst_25 {dimension_numbers = #tpu.dot_dimension_numbers<[1], [0], [0], [1], [0, 0, 1, 1], [], []>} : vector<8x32xbf16>, vector<32x128xbf16>, vector<8x128xf32> -> vector<8x128xf32>
    %132 = arith.addf %129, %131 : vector<8x128xf32>
    %133 = arith.negf %132 : vector<8x128xf32>
    %134 = math.exp %133 : vector<8x128xf32>
    %cst_26 = arith.constant 1.000000e+00 : f32
    %135 = vector.broadcast %cst_26 : f32 to vector<8x128xf32>
    %136 = arith.addf %135, %134 : vector<8x128xf32>
    %137 = arith.divf %135, %136 : vector<8x128xf32>
    %138 = math.tanh %132 : vector<8x128xf32>
    %139 = vector.extract_strided_slice %137 {offsets = [0, 0], sizes = [8, 32], strides = [1, 1]} : vector<8x128xf32> to vector<8x32xf32>
    %140 = vector.extract_strided_slice %137 {offsets = [0, 32], sizes = [8, 32], strides = [1, 1]} : vector<8x128xf32> to vector<8x32xf32>
    %141 = vector.extract_strided_slice %138 {offsets = [0, 64], sizes = [8, 32], strides = [1, 1]} : vector<8x128xf32> to vector<8x32xf32>
    %142 = vector.extract_strided_slice %137 {offsets = [0, 96], sizes = [8, 32], strides = [1, 1]} : vector<8x128xf32> to vector<8x32xf32>
    %143 = arith.mulf %140, %126 : vector<8x32xf32>
    %144 = arith.mulf %139, %141 : vector<8x32xf32>
    %145 = arith.addf %143, %144 : vector<8x32xf32>
    %146 = math.tanh %145 : vector<8x32xf32>
    %147 = arith.mulf %142, %146 : vector<8x32xf32>
    %148 = vector.extract_strided_slice %12 {offsets = [56, 0], sizes = [8, 128], strides = [1, 1]} : vector<64x128xf32> to vector<8x128xf32>
    %149 = arith.truncf %147 : vector<8x32xf32> to vector<8x32xbf16>
    %cst_27 = arith.constant dense<0.000000e+00> : vector<8x128xf32>
    %150 = tpu.matmul %149, %1, %cst_27 {dimension_numbers = #tpu.dot_dimension_numbers<[1], [0], [0], [1], [0, 0, 1, 1], [], []>} : vector<8x32xbf16>, vector<32x128xbf16>, vector<8x128xf32> -> vector<8x128xf32>
    %151 = arith.addf %148, %150 : vector<8x128xf32>
    %152 = arith.negf %151 : vector<8x128xf32>
    %153 = math.exp %152 : vector<8x128xf32>
    %cst_28 = arith.constant 1.000000e+00 : f32
    %154 = vector.broadcast %cst_28 : f32 to vector<8x128xf32>
    %155 = arith.addf %154, %153 : vector<8x128xf32>
    %156 = arith.divf %154, %155 : vector<8x128xf32>
    %157 = math.tanh %151 : vector<8x128xf32>
    %158 = vector.extract_strided_slice %156 {offsets = [0, 0], sizes = [8, 32], strides = [1, 1]} : vector<8x128xf32> to vector<8x32xf32>
    %159 = vector.extract_strided_slice %156 {offsets = [0, 32], sizes = [8, 32], strides = [1, 1]} : vector<8x128xf32> to vector<8x32xf32>
    %160 = vector.extract_strided_slice %157 {offsets = [0, 64], sizes = [8, 32], strides = [1, 1]} : vector<8x128xf32> to vector<8x32xf32>
    %161 = vector.extract_strided_slice %156 {offsets = [0, 96], sizes = [8, 32], strides = [1, 1]} : vector<8x128xf32> to vector<8x32xf32>
    %162 = arith.mulf %159, %145 : vector<8x32xf32>
    %163 = arith.mulf %158, %160 : vector<8x32xf32>
    %164 = arith.addf %162, %163 : vector<8x32xf32>
    %165 = math.tanh %164 : vector<8x32xf32>
    %166 = arith.mulf %161, %165 : vector<8x32xf32>
    %167 = arith.truncf %166 : vector<8x32xf32> to vector<8x32xbf16>
    %cst_29 = arith.constant dense<0.000000e+00> : vector<8x128xf32>
    %168 = tpu.matmul %167, %2, %cst_29 {dimension_numbers = #tpu.dot_dimension_numbers<[1], [0], [0], [1], [0, 0, 1, 1], [], []>} : vector<8x32xbf16>, vector<32x128xbf16>, vector<8x128xf32> -> vector<8x128xf32>
    %169 = vector.broadcast %5 : vector<1x128xf32> to vector<8x128xf32>
    %170 = arith.addf %168, %169 : vector<8x128xf32>
    %cst_30 = arith.constant 0.000000e+00 : f32
    %171 = vector.broadcast %cst_30 : f32 to vector<8x128xf32>
    %172 = arith.maximumf %170, %171 : vector<8x128xf32>
    %173 = arith.truncf %172 : vector<8x128xf32> to vector<8x128xbf16>
    %cst_31 = arith.constant dense<0.000000e+00> : vector<8x128xf32>
    %174 = tpu.matmul %173, %3, %cst_31 {dimension_numbers = #tpu.dot_dimension_numbers<[1], [0], [0], [1], [0, 0, 1, 1], [], []>} : vector<8x128xbf16>, vector<128x128xbf16>, vector<8x128xf32> -> vector<8x128xf32>
    %175 = vector.broadcast %6 : vector<1x128xf32> to vector<8x128xf32>
    %176 = arith.addf %174, %175 : vector<8x128xf32>
    %c0_32 = arith.constant 0 : index
    %c0_33 = arith.constant 0 : index
    %177 = vector.load %arg3[%c0_32, %c0_33] : memref<8x128xf32, #tpu.memory_space<vmem>>, vector<8x128xf32>
    tpu.vector_store %arg3[%c0_32, %c0_33], %176 {strides = array<i32>} : memref<8x128xf32, #tpu.memory_space<vmem>>, vector<8x128xf32>,
    return
  }
}

</mosaic_0001>

<bundles_post_ra>
// kernel: tpu_custom_call.1
= control target key start
LH: loop header
LB: loop body
LE: loop exit
PB: predicated region body
PF: predicated region fallthrough
CT: control target
= control target key end

     0   :  { %8 = vsyncpa [#allocation3], 0  ;;  %s1440_s0 = inlined_call_operand.vmem [shape: f32[8,8,4], index: 0, kind: input, shape index: {}]   ;;  %s1441_s1 = inlined_call_operand.hbm [shape: bf16[208,128], index: 1, kind: input, shape index: {}]   ;;  %s1442_s2 = inlined_call_operand.vmem [shape: f32[3,128], index: 2, kind: input, shape index: {}]   ;;  %s1443_s3 = inlined_call_operand.hbm [shape: f32[8,128], index: 3, kind: output, shape index: {}]  }
   0x1   :  { %9 = vsyncpa [#allocation4], 0  ;;  %s1225_s12 = smov [#allocation2]   ;;  %s1177_s16 = scalar_lea.hbm %s1441_s1, 1664 }
   0x2   :  { %s17_s13 = sshll.u32 %s1225_s12, 4  ;;  %p1178_p0 = scmp.ne.s32.totalorder %s1441_s1, %s1177_s16  ;;  %s18_s13 = int_to_ptr.vmem [resolvable:$true] %s17_s13 }
   0x3   :  { %p1181_p1 = scmp.lt.u32.totalorder %s1177_s16, %s1441_s1 }
   0x5   :  { %p1183_p2 = pnand %p1181_p1, %p1178_p0 }
   0x7   :  { %1186 = shalt.err (!%p1183_p2)
}
   0x8   :  { %s1187_s21 = scalar_lea.vmem %s18_s13, 1664  ;;  %p1192_p4 = scmp.lt.s32.totalorder %s18_s13, %s18_s13 }
   0x9   :  { %p1188_p3 = scmp.ne.s32.totalorder %s18_s13, %s1187_s21  ;;  %p1193_p5 = scmp.lt.s32.totalorder %s1187_s21, %s1187_s21 }
   0xb   :  { %p1194_p6 = por %p1193_p5, %p1192_p4 }
   0xd   :  { %p1195_p7 = pnand %p1194_p6, %p1188_p3 }
   0xf   :  { %1198 = shalt.err (!%p1195_p7)
}
  0x10   :  { %s1226_s22 = smov 64   ;;  %s1227_s23 = smov 4  }
  0x11   :  { %23 = dma.hbm_to_vmem [thread:$0]  %s1441_s1, 1664, %s18_s13, [#allocation3], %s1226_s22, %s1226_s22, %s1227_s23  }
  0x12   :  { %1221 = dma.done.wait [#allocation3], 1664  }
  0x13   :  { %1222 = vsyncadd [#allocation3], 4294965632  ;;  %v1228_v0 = vmov 0.0   ;;  %vm1229_vm0 = vmmov 0   ;;  %vm87_vm1 = vcmask 1041408   ;;  %v58_v2 = vld [vmem:[%s1440_s0] sm:$0xff] }
  0x14   :  { %1024 = vmatprep.subr.bf16.mxu1 %v1228_v0  ;;  %1028 = vmatprep.mubr.msk.bf16.mxu1 %vm1229_vm0, %v1228_v0  ;;  %v30_v1 = vld [vmem:[#allocation2] sm:$0x3]  ;;  %v59_v3 = vld [vmem:[%s1440_s0 + $0x8] sm:$0xff]  ;;  %vm74_vm2 = vcmask 31744   ;;  %v60_v6 = vld [vmem:[%s1440_s0 + $0x10] sm:$0xff]  ;;  %v1230_v17 = vmov 0  }
  0x15   :  { %1092 = vmatprep.subr.msk.bf16.mxu0 %vm87_vm1, %v30_v1  ;;  %v89_v4 = vsel %vm87_vm1, %v30_v1, 0  ;;  %v66_v5 = vpack.c.bf16 %v59_v3, %v58_v2  ;;  %v61_v7 = vld [vmem:[%s1440_s0 + $0x18] sm:$0xff]  ;;  %v1282_v9 = vld [vmem:[#allocation2 + $0x8] sm:$0xff]   ;;  %v62_v10 = vld [vmem:[%s1440_s0 + $0x20] sm:$0xff]  ;;  %s1231_s15 = smov 32   ;;  %vm168_vm3 = vcmask 261120  }
  0x16   :  { %991 = vmatpush3.bf16.msra.mxu0 %v89_v4  ;;  %v67_v8 = vpack.c.bf16 %v61_v7, %v60_v6  ;;  %v63_v11 = vld [vmem:[%s1440_s0 + $0x28] sm:$0xff]  ;;  %v64_v13 = vld [vmem:[%s1440_s0 + $0x30] sm:$0xff]  ;;  %v65_v14 = vld [vmem:[%s1440_s0 + $0x38] sm:$0xff]  ;;  %1025 = vmatpush3.bf16.msra.mxu1 %v1282_v9  ;;  %s1232_s20 = smov [#allocation5]  }
  0x17   :  { %992 = vmatprep.mubr.msk.bf16.mxu0 %vm74_vm2, %v66_v5  ;;  %1000 = vmatprep.subr.bf16.mxu0 %v1228_v0  ;;  %v68_v12 = vpack.c.bf16 %v63_v11, %v62_v10  ;;  %v1298_v15 = vld [vmem:[#allocation2 + $0x10] sm:$0xff]   ;;  %v69_v16 = vpack.c.bf16 %v65_v14, %v64_v13  ;;  %v914_v18 = vld [vmem:[%s1442_s2] ss:$0 sm:$0xff]  ;;  %s905_s21 = sshll.u32 %s1232_s20, 4  ;;  %s906_s21 = int_to_ptr.vmem [resolvable:$true] %s905_s21 }
  0x18   :  { %1026 = vmatprep.subr.bf16.mxu1 %v1228_v0  ;;  %p1204_p9 = scmp.lt.s32.totalorder %s906_s21, %s906_s21 }
  0x19   :  { %993 = vmatmul.mubr.msk.bf16.vlgmr.msra.gmra.mrb[0].mxu0 %vm74_vm2, %v67_v8 }
  0x1a   :  { %1001 = vmatpush3.bf16.msra.mxu0 %v1282_v9  ;;  %996 = vmatprep.mubr.msk.bf16.mxu0 %vm74_vm2, %v68_v12 }
  0x1b   :  { %1002 = vmatprep.subr.bf16.mxu0 %v1228_v0  ;;  %1027 = vmatpush3.bf16.msra.mxu1 %v1298_v15 }
  0x1c   :  { %1040 = vmatprep.subr.bf16.mxu1 %v1228_v0 }
  0x1e   :  { %1003 = vmatpush3.bf16.msra.mxu0 %v1298_v15 }
  0x1f   :  { %1008 = vmatprep.subr.bf16.mxu0 %v1228_v0 }
  0x21   :  { %997 = vmatmul.mubr.msk.bf16.gmra.mrb[4].mxu0 %vm74_vm2, %v69_v16 }
  0x22   :  { %1004 = vmatprep.mubr.msk.bf16.mxu0 %vm1229_vm0, %v1228_v0 }
  0x29   :  { %1005 = vmatmul.mubr.bf16.vlgmr.msra.gmra.mrb[8].mxu0 %v1230_v17 }
  0x2a   :  { %1009 = vmatpush3.bf16.msra.mxu0 %v1282_v9  ;;  %1012 = vmatprep.mubr.msk.bf16.mxu0 %vm1229_vm0, %v1228_v0 }
  0x2b   :  { %1010 = vmatprep.subr.bf16.mxu0 %v1228_v0 }
  0x2e   :  { %1011 = vmatpush3.bf16.msra.mxu0 %v1298_v15 }
  0x2f   :  { %1016 = vmatprep.subr.bf16.mxu0 %v1228_v0 }
  0xec   :  { %v994_v19 = vpop.f32.mrb[0].mxu0 }
  0xed   :  { %v1322_v20 = vadd.f32 %v994_v19, %v914_v18  ;;  %v125_v21 = vpop.f32.mrb[1].mxu0 }
  0xee   :  { %v995_v22 = vpop.f32.mrb[2].mxu0  ;;  %v126_v34 = vadd.f32 %v914_v18, %v125_v21 }
  0xef   :  { %v1324_v23 = vadd.f32 %v995_v22, %v914_v18  ;;  %v128_v24 = vpop.f32.mrb[3].mxu0 }
  0xf0   :  { %v129_v25 = vadd.f32 %v914_v18, %v128_v24 }
  0xf4   :  { %v998_v26 = vpop.f32.mrb[4].mxu0 }
  0xf5   :  { %v1326_v27 = vadd.f32 %v998_v26, %v914_v18  ;;  %v141_v28 = vpop.f32.mrb[5].mxu0 }
  0xf6   :  { %v1328_v29 = vadd.f32 %v914_v18, %v141_v28  ;;  %v999_v30 = vpop.f32.mrb[6].mxu0 }
  0xf7   :  { %v1330_v31 = vadd.f32 %v999_v30, %v914_v18  ;;  %v144_v32 = vpop.f32.mrb[7].mxu0 }
  0xf8   :  { %v1332_v33 = vadd.f32 %v914_v18, %v144_v32 }
  0xfc   :  { %v206_v35 = vpop.f32.mrb[8].mxu0 }
  0xfd   :  { %v212_v36 = vadd.f32 %v206_v35, %v126_v34  ;;  %v1006_v37 = vpop.f32.mrb[9].mxu0 }
  0xfe   :  { %v209_v38 = vpop.f32.mrb[10].mxu0 }
  0xff   :  { %v1007_v39 = vpop.f32.mrb[11].mxu0  ;;  %1113 = vtanh.f32 %v212_v36  ;;  %v921_v41 = vmul.f32 -1.442695, %v212_v36 }
 0x101   :  { %1115 = vpow2.f32 %v921_v41 }
 0x109   :  { %v1114_v40 = vpop.eup %1113 }
 0x10a   :  { %222 = vrot.lane.b32.xlu0 %v1114_v40, %s1226_s22 }
 0x10b   :  { %v1116_v42 = vpop.eup %1115 }
 0x10c   :  { %v216_v43 = vadd.f32 1.0, %v1116_v42 }
 0x10e   :  { %1117 = vrcp.f32 %v216_v43 }
 0x118   :  { %v1118_v44 = vpop.eup %1117 }
 0x119   :  { %v220_v47 = vmul.f32 0.0, %v1118_v44 }
 0x17c   :  { %v223_v45 = vpop.permute.xlu0 %222 }
 0x17d   :  { %v225_v46 = vmul.f32 %v1118_v44, %v223_v45 }
 0x17f   :  { %227 = vrot.lane.b32.xlu0 %v225_v46, %s1231_s15 }
 0x1f1   :  { %v228_v48 = vpop.permute.xlu0 %227 }
 0x1f2   :  { %v230_v49 = vadd.f32 %v228_v48, %v220_v47 }
 0x1f4   :  { %1119 = vtanh.f32 %v230_v49 }
 0x1fe   :  { %v1120_v50 = vpop.eup %1119 }
 0x1ff   :  { %233 = vrot.lane.b32.xlu1 %v1120_v50, %s1226_s22 }
 0x271   :  { %v234_v51 = vpop.permute.xlu1 %233 }
 0x272   :  { %v236_v52 = vmul.f32 %v1118_v44, %v234_v51 }
 0x274   :  { %v237_v53 = vpack.c.bf16 %v236_v52, %v236_v52 }
 0x276   :  { %239 = vrot.lane.b32.xlu1 %v237_v53, %s1231_s15 }
 0x2e8   :  { %v240_v54 = vpop.permute.xlu1 %239 }
 0x2e9   :  { %1013 = vmatmul.mubr.msk.bf16.vlgmr.msra.gmra.mrb[12].mxu0 %vm168_vm3, %v240_v54 }
 0x2ea   :  { %1017 = vmatpush3.bf16.msra.mxu0 %v1282_v9  ;;  %1020 = vmatprep.mubr.msk.bf16.mxu0 %vm1229_vm0, %v1228_v0 }
 0x2eb   :  { %1018 = vmatprep.subr.bf16.mxu0 %v1228_v0 }
 0x2ee   :  { %1019 = vmatpush3.bf16.msra.mxu0 %v1298_v15 }
 0x2ef   :  { %1032 = vmatprep.subr.bf16.mxu0 %v1228_v0 }
 0x3bc   :  { %v278_v55 = vpop.f32.mrb[12].mxu0 }
 0x3bd   :  { %v284_v56 = vadd.f32 %v278_v55, %v129_v25  ;;  %v1014_v57 = vpop.f32.mrb[13].mxu0 }
 0x3be   :  { %v281_v58 = vpop.f32.mrb[14].mxu0 }
 0x3bf   :  { %1121 = vtanh.f32 %v284_v56  ;;  %v1015_v59 = vpop.f32.mrb[15].mxu0  ;;  %v923_v61 = vmul.f32 -1.442695, %v284_v56 }
 0x3c1   :  { %1123 = vpow2.f32 %v923_v61 }
 0x3c9   :  { %v1122_v60 = vpop.eup %1121 }
 0x3ca   :  { %294 = vrot.lane.b32.xlu0 %v1122_v60, %s1226_s22 }
 0x3cb   :  { %v1124_v62 = vpop.eup %1123 }
 0x3cc   :  { %v288_v63 = vadd.f32 1.0, %v1124_v62 }
 0x3ce   :  { %1125 = vrcp.f32 %v288_v63 }
 0x3d8   :  { %v1126_v1 = vpop.eup %1125 }
 0x3d9   :  { %v292_v4 = vmul.f32 %v1126_v1, %v230_v49 }
 0x43c   :  { %v295_v2 = vpop.permute.xlu0 %294 }
 0x43d   :  { %v297_v3 = vmul.f32 %v1126_v1, %v295_v2 }
 0x43f   :  { %299 = vrot.lane.b32.xlu1 %v297_v3, %s1231_s15 }
 0x4b1   :  { %v300_v5 = vpop.permute.xlu1 %299 }
 0x4b2   :  { %v302_v6 = vadd.f32 %v300_v5, %v292_v4 }
 0x4b4   :  { %1127 = vtanh.f32 %v302_v6 }
 0x4be   :  { %v1128_v7 = vpop.eup %1127 }
 0x4bf   :  { %305 = vrot.lane.b32.xlu0 %v1128_v7, %s1226_s22 }
 0x531   :  { %v306_v8 = vpop.permute.xlu0 %305 }
 0x532   :  { %v308_v10 = vmul.f32 %v1126_v1, %v306_v8 }
 0x534   :  { %v309_v11 = vpack.c.bf16 %v308_v10, %v308_v10 }
 0x536   :  { %311 = vrot.lane.b32.xlu1 %v309_v11, %s1231_s15 }
 0x5a8   :  { %v312_v12 = vpop.permute.xlu1 %311 }
 0x5a9   :  { %1021 = vmatmul.mubr.msk.bf16.vlgmr.msra.gmra.mrb[16].mxu0 %vm168_vm3, %v312_v12 }
 0x5aa   :  { %1033 = vmatpush3.bf16.msra.mxu0 %v1282_v9  ;;  %1036 = vmatprep.mubr.msk.bf16.mxu0 %vm1229_vm0, %v1228_v0 }
 0x5ab   :  { %1034 = vmatprep.subr.bf16.mxu0 %v1228_v0 }
 0x5ae   :  { %1035 = vmatpush3.bf16.msra.mxu0 %v1298_v15 }
 0x5af   :  { %1048 = vmatprep.subr.bf16.mxu0 %v1228_v0 }
 0x67c   :  { %v350_v13 = vpop.f32.mrb[16].mxu0 }
 0x67d   :  { %v356_v14 = vadd.f32 %v350_v13, %v1322_v20  ;;  %v1022_v16 = vpop.f32.mrb[17].mxu0 }
 0x67e   :  { %v353_v17 = vpop.f32.mrb[18].mxu0 }
 0x67f   :  { %1129 = vtanh.f32 %v356_v14  ;;  %v1023_v18 = vpop.f32.mrb[19].mxu0  ;;  %v925_v21 = vmul.f32 -1.442695, %v356_v14 }
 0x681   :  { %1131 = vpow2.f32 %v925_v21 }
 0x689   :  { %v1130_v19 = vpop.eup %1129 }
 0x68a   :  { %366 = vrot.lane.b32.xlu0 %v1130_v19, %s1226_s22 }
 0x68b   :  { %v1132_v22 = vpop.eup %1131 }
 0x68c   :  { %v360_v24 = vadd.f32 1.0, %v1132_v22 }
 0x68e   :  { %1133 = vrcp.f32 %v360_v24 }
 0x698   :  { %v1134_v25 = vpop.eup %1133 }
 0x699   :  { %v364_v30 = vmul.f32 %v1134_v25, %v302_v6 }
 0x6fc   :  { %v367_v26 = vpop.permute.xlu0 %366 }
 0x6fd   :  { %v369_v28 = vmul.f32 %v1134_v25, %v367_v26 }
 0x6ff   :  { %371 = vrot.lane.b32.xlu1 %v369_v28, %s1231_s15 }
 0x771   :  { %v372_v32 = vpop.permute.xlu1 %371 }
 0x772   :  { %v374_v20 = vadd.f32 %v372_v32, %v364_v30 }
 0x774   :  { %1135 = vtanh.f32 %v374_v20 }
 0x77e   :  { %v1136_v34 = vpop.eup %1135 }
 0x77f   :  { %377 = vrot.lane.b32.xlu0 %v1136_v34, %s1226_s22 }
 0x7f1   :  { %v378_v35 = vpop.permute.xlu0 %377 }
 0x7f2   :  { %v380_v36 = vmul.f32 %v1134_v25, %v378_v35 }
 0x7f4   :  { %v381_v37 = vpack.c.bf16 %v380_v36, %v380_v36 }
 0x7f6   :  { %383 = vrot.lane.b32.xlu1 %v381_v37, %s1231_s15 }
 0x868   :  { %v384_v38 = vpop.permute.xlu1 %383 }
 0x869   :  { %1029 = vmatmul.mubr.msk.bf16.vlgmr.msra.gmra.mrb[0].mxu1 %vm168_vm3, %v384_v38 }
 0x86a   :  { %1041 = vmatpush3.bf16.msra.mxu1 %v1282_v9  ;;  %1044 = vmatprep.mubr.msk.bf16.mxu1 %vm1229_vm0, %v1228_v0 }
 0x86b   :  { %1042 = vmatprep.subr.bf16.mxu1 %v1228_v0 }
 0x86e   :  { %1043 = vmatpush3.bf16.msra.mxu1 %v1298_v15 }
 0x86f   :  { %1056 = vmatprep.subr.bf16.mxu1 %v1228_v0 }
 0x93c   :  { %v422_v39 = vpop.f32.mrb[0].mxu1 }
 0x93d   :  { %v428_v40 = vadd.f32 %v422_v39, %v1324_v23  ;;  %v1030_v41 = vpop.f32.mrb[1].mxu1 }
 0x93e   :  { %v425_v42 = vpop.f32.mrb[2].mxu1 }
 0x93f   :  { %1137 = vtanh.f32 %v428_v40  ;;  %v1031_v43 = vpop.f32.mrb[3].mxu1  ;;  %v927_v45 = vmul.f32 -1.442695, %v428_v40 }
 0x941   :  { %1139 = vpow2.f32 %v927_v45 }
 0x949   :  { %v1138_v44 = vpop.eup %1137 }
 0x94a   :  { %438 = vrot.lane.b32.xlu0 %v1138_v44, %s1226_s22 }
 0x94b   :  { %v1140_v46 = vpop.eup %1139 }
 0x94c   :  { %v432_v47 = vadd.f32 1.0, %v1140_v46 }
 0x94e   :  { %1141 = vrcp.f32 %v432_v47 }
 0x958   :  { %v1142_v48 = vpop.eup %1141 }
 0x959   :  { %v436_v51 = vmul.f32 %v1142_v48, %v374_v20 }
 0x9bc   :  { %v439_v49 = vpop.permute.xlu0 %438 }
 0x9bd   :  { %v441_v50 = vmul.f32 %v1142_v48, %v439_v49 }
 0x9bf   :  { %443 = vrot.lane.b32.xlu1 %v441_v50, %s1231_s15 }
 0xa31   :  { %v444_v52 = vpop.permute.xlu1 %443 }
 0xa32   :  { %v446_v23 = vadd.f32 %v444_v52, %v436_v51 }
 0xa34   :  { %1143 = vtanh.f32 %v446_v23 }
 0xa3e   :  { %v1144_v53 = vpop.eup %1143 }
 0xa3f   :  { %449 = vrot.lane.b32.xlu0 %v1144_v53, %s1226_s22 }
 0xab1   :  { %v450_v54 = vpop.permute.xlu0 %449 }
 0xab2   :  { %v452_v55 = vmul.f32 %v1142_v48, %v450_v54 }
 0xab4   :  { %v453_v56 = vpack.c.bf16 %v452_v55, %v452_v55 }
 0xab6   :  { %455 = vrot.lane.b32.xlu1 %v453_v56, %s1231_s15 }
 0xb28   :  { %v456_v57 = vpop.permute.xlu1 %455 }
 0xb29   :  { %1037 = vmatmul.mubr.msk.bf16.vlgmr.msra.gmra.mrb[20].mxu0 %vm168_vm3, %v456_v57 }
 0xb2a   :  { %1049 = vmatpush3.bf16.msra.mxu0 %v1282_v9  ;;  %1052 = vmatprep.mubr.msk.bf16.mxu0 %vm1229_vm0, %v1228_v0 }
 0xb2b   :  { %1050 = vmatprep.subr.bf16.mxu0 %v1228_v0 }
 0xb2e   :  { %1051 = vmatpush3.bf16.msra.mxu0 %v1298_v15 }
 0xb2f   :  { %1064 = vmatprep.subr.bf16.mxu0 %v1228_v0 }
 0xbfc   :  { %v494_v58 = vpop.f32.mrb[20].mxu0 }
 0xbfd   :  { %v500_v59 = vadd.f32 %v494_v58, %v1328_v29  ;;  %v1038_v60 = vpop.f32.mrb[21].mxu0 }
 0xbfe   :  { %v497_v61 = vpop.f32.mrb[22].mxu0 }
 0xbff   :  { %1145 = vtanh.f32 %v500_v59  ;;  %v1039_v62 = vpop.f32.mrb[23].mxu0  ;;  %v929_v1 = vmul.f32 -1.442695, %v500_v59 }
 0xc01   :  { %1147 = vpow2.f32 %v929_v1 }
 0xc09   :  { %v1146_v63 = vpop.eup %1145 }
 0xc0a   :  { %510 = vrot.lane.b32.xlu0 %v1146_v63, %s1226_s22 }
 0xc0b   :  { %v1148_v2 = vpop.eup %1147 }
 0xc0c   :  { %v504_v3 = vadd.f32 1.0, %v1148_v2 }
 0xc0e   :  { %1149 = vrcp.f32 %v504_v3 }
 0xc18   :  { %v1150_v4 = vpop.eup %1149 }
 0xc19   :  { %v508_v7 = vmul.f32 %v1150_v4, %v446_v23 }
 0xc7c   :  { %v511_v5 = vpop.permute.xlu0 %510 }
 0xc7d   :  { %v513_v6 = vmul.f32 %v1150_v4, %v511_v5 }
 0xc7f   :  { %515 = vrot.lane.b32.xlu1 %v513_v6, %s1231_s15 }
 0xcf1   :  { %v516_v8 = vpop.permute.xlu1 %515 }
 0xcf2   :  { %v518_v29 = vadd.f32 %v516_v8, %v508_v7  ;;  %v1103_v7 = vld [vmem:[#allocation2 + $0x18] sm:$0xff]   ;;  %v1104_v8 = vld [vmem:[#allocation2 + $0x20] sm:$0xff]  }
 0xcf4   :  { %1151 = vtanh.f32 %v518_v29 }
 0xcfe   :  { %v1152_v10 = vpop.eup %1151 }
 0xcff   :  { %521 = vrot.lane.b32.xlu0 %v1152_v10, %s1226_s22  ;;  %v1105_v10 = vld [vmem:[#allocation2 + $0x28] sm:$0xff]  }
 0xd71   :  { %v522_v11 = vpop.permute.xlu0 %521 }
 0xd72   :  { %v524_v12 = vmul.f32 %v1150_v4, %v522_v11  ;;  %v1106_v11 = vld [vmem:[#allocation2 + $0x30] sm:$0xff]  }
 0xd74   :  { %v525_v13 = vpack.c.bf16 %v524_v12, %v524_v12  ;;  %v1107_v12 = vld [vmem:[#allocation2 + $0x38] sm:$0xff]  }
 0xd76   :  { %527 = vrot.lane.b32.xlu1 %v525_v13, %s1231_s15 }
 0xde8   :  { %v528_v14 = vpop.permute.xlu1 %527 }
 0xde9   :  { %1045 = vmatmul.mubr.msk.bf16.vlgmr.msra.gmra.mrb[4].mxu1 %vm168_vm3, %v528_v14 }
 0xdea   :  { %1057 = vmatpush3.bf16.msra.mxu1 %v1282_v9  ;;  %1060 = vmatprep.mubr.msk.bf16.mxu1 %vm1229_vm0, %v1228_v0 }
 0xdeb   :  { %1058 = vmatprep.subr.bf16.mxu1 %v1228_v0 }
 0xdee   :  { %1059 = vmatpush3.bf16.msra.mxu1 %v1298_v15 }
 0xdef   :  { %1072 = vmatprep.subr.bf16.mxu1 %v1228_v0 }
 0xebc   :  { %v566_v16 = vpop.f32.mrb[4].mxu1 }
 0xebd   :  { %v572_v17 = vadd.f32 %v566_v16, %v1332_v33  ;;  %v1046_v18 = vpop.f32.mrb[5].mxu1  ;;  %v1108_v16 = vld [vmem:[#allocation2 + $0x40] sm:$0xff]  }
 0xebe   :  { %v569_v19 = vpop.f32.mrb[6].mxu1  ;;  %v1109_v18 = vld [vmem:[#allocation2 + $0x48] sm:$0xff]  }
 0xebf   :  { %1153 = vtanh.f32 %v572_v17  ;;  %v1047_v21 = vpop.f32.mrb[7].mxu1  ;;  %v931_v9 = vmul.f32 -1.442695, %v572_v17  ;;  %v1110_v19 = vld [vmem:[#allocation2 + $0x50] sm:$0xff]  }
 0xec1   :  { %1155 = vpow2.f32 %v931_v9  ;;  %v1112_v9 = vld [vmem:[#allocation2 + $0x60] sm:$0xff]  }
 0xec9   :  { %v1154_v22 = vpop.eup %1153 }
 0xeca   :  { %582 = vrot.lane.b32.xlu0 %v1154_v22, %s1226_s22  ;;  %v1111_v22 = vld [vmem:[#allocation2 + $0x58] sm:$0xff]  }
 0xecb   :  { %v1156_v24 = vpop.eup %1155 }
 0xecc   :  { %v576_v25 = vadd.f32 1.0, %v1156_v24  ;;  %v936_v24 = vld [vmem:[%s1442_s2 + $0x1] ss:$0 sm:$0xff] }
 0xece   :  { %1157 = vrcp.f32 %v576_v25 }
 0xed8   :  { %v1158_v26 = vpop.eup %1157 }
 0xed9   :  { %v580_v30 = vmul.f32 %v1158_v26, %v518_v29 }
 0xf3c   :  { %v583_v28 = vpop.permute.xlu0 %582 }
 0xf3d   :  { %v585_v15 = vmul.f32 %v1158_v26, %v583_v28 }
 0xf3f   :  { %587 = vrot.lane.b32.xlu1 %v585_v15, %s1231_s15 }
 0xfb1   :  { %v588_v32 = vpop.permute.xlu1 %587 }
 0xfb2   :  { %v590_v33 = vadd.f32 %v588_v32, %v580_v30 }
 0xfb4   :  { %1159 = vtanh.f32 %v590_v33 }
 0xfbe   :  { %v1160_v20 = vpop.eup %1159 }
 0xfbf   :  { %593 = vrot.lane.b32.xlu0 %v1160_v20, %s1226_s22  ;;  %v940_v20 = vld [vmem:[%s1442_s2 + $0x2] ss:$0 sm:$0xff] }
0x1031   :  { %v594_v34 = vpop.permute.xlu0 %593 }
0x1032   :  { %v596_v35 = vmul.f32 %v1158_v26, %v594_v34 }
0x1034   :  { %v597_v36 = vpack.c.bf16 %v596_v35, %v596_v35 }
0x1036   :  { %599 = vrot.lane.b32.xlu1 %v597_v36, %s1231_s15 }
0x10a8   :  { %v600_v37 = vpop.permute.xlu1 %599 }
0x10a9   :  { %1053 = vmatmul.mubr.msk.bf16.vlgmr.msra.gmra.mrb[24].mxu0 %vm168_vm3, %v600_v37 }
0x10aa   :  { %1068 = vmatprep.mubr.msk.bf16.mxu0 %vm1229_vm0, %v1228_v0  ;;  %1065 = vmatpush3.bf16.msra.mxu0 %v1103_v7 }
0x10ab   :  { %1066 = vmatprep.subr.bf16.mxu0 %v1228_v0 }
0x10ae   :  { %1067 = vmatpush3.bf16.msra.mxu0 %v1104_v8 }
0x117c   :  { %v638_v38 = vpop.f32.mrb[24].mxu0 }
0x117d   :  { %v644_v39 = vadd.f32 %v638_v38, %v1326_v27  ;;  %v1054_v40 = vpop.f32.mrb[25].mxu0 }
0x117e   :  { %v641_v41 = vpop.f32.mrb[26].mxu0 }
0x117f   :  { %1161 = vtanh.f32 %v644_v39  ;;  %v1055_v42 = vpop.f32.mrb[27].mxu0  ;;  %v933_v44 = vmul.f32 -1.442695, %v644_v39 }
0x1181   :  { %1163 = vpow2.f32 %v933_v44 }
0x1189   :  { %v1162_v43 = vpop.eup %1161 }
0x118a   :  { %654 = vrot.lane.b32.xlu0 %v1162_v43, %s1226_s22 }
0x118b   :  { %v1164_v45 = vpop.eup %1163 }
0x118c   :  { %v648_v46 = vadd.f32 1.0, %v1164_v45 }
0x118e   :  { %1165 = vrcp.f32 %v648_v46 }
0x1198   :  { %v1166_v47 = vpop.eup %1165 }
0x1199   :  { %v652_v50 = vmul.f32 %v1166_v47, %v590_v33 }
0x11fc   :  { %v655_v48 = vpop.permute.xlu0 %654 }
0x11fd   :  { %v657_v49 = vmul.f32 %v1166_v47, %v655_v48 }
0x11ff   :  { %659 = vrot.lane.b32.xlu1 %v657_v49, %s1231_s15 }
0x1271   :  { %v660_v51 = vpop.permute.xlu1 %659 }
0x1272   :  { %v662_v27 = vadd.f32 %v660_v51, %v652_v50 }
0x1274   :  { %1167 = vtanh.f32 %v662_v27 }
0x127e   :  { %v1168_v52 = vpop.eup %1167 }
0x127f   :  { %665 = vrot.lane.b32.xlu0 %v1168_v52, %s1226_s22 }
0x12f1   :  { %v666_v23 = vpop.permute.xlu0 %665 }
0x12f2   :  { %v668_v53 = vmul.f32 %v1166_v47, %v666_v23 }
0x12f4   :  { %v669_v54 = vpack.c.bf16 %v668_v53, %v668_v53 }
0x12f6   :  { %671 = vrot.lane.b32.xlu1 %v669_v54, %s1231_s15 }
0x1368   :  { %v672_v55 = vpop.permute.xlu1 %671 }
0x1369   :  { %1061 = vmatmul.mubr.msk.bf16.vlgmr.msra.gmra.mrb[8].mxu1 %vm168_vm3, %v672_v55 }
0x136a   :  { %1088 = vmatprep.mubr.msk.bf16.mxu1 %vm1229_vm0, %v1228_v0  ;;  %1073 = vmatpush3.bf16.msra.mxu1 %v1105_v10 }
0x136b   :  { %1074 = vmatprep.subr.bf16.mxu1 %v1228_v0 }
0x136e   :  { %1075 = vmatpush3.bf16.msra.mxu1 %v1106_v11 }
0x136f   :  { %1076 = vmatprep.subr.bf16.mxu1 %v1228_v0 }
0x1372   :  { %1077 = vmatpush3.bf16.msra.mxu1 %v1107_v12 }
0x1373   :  { %1078 = vmatprep.subr.bf16.mxu1 %v1228_v0 }
0x1376   :  { %1079 = vmatpush3.bf16.msra.mxu1 %v1108_v16 }
0x1377   :  { %1080 = vmatprep.subr.bf16.mxu1 %v1228_v0 }
0x137a   :  { %1081 = vmatpush3.bf16.msra.mxu1 %v1109_v18 }
0x137b   :  { %1082 = vmatprep.subr.bf16.mxu1 %v1228_v0 }
0x137e   :  { %1083 = vmatpush3.bf16.msra.mxu1 %v1110_v19 }
0x137f   :  { %1084 = vmatprep.subr.bf16.mxu1 %v1228_v0 }
0x1382   :  { %1085 = vmatpush3.bf16.msra.mxu1 %v1111_v22 }
0x1383   :  { %1086 = vmatprep.subr.bf16.mxu1 %v1228_v0 }
0x1386   :  { %1087 = vmatpush3.bf16.msra.mxu1 %v1112_v9 }
0x143c   :  { %v710_v56 = vpop.f32.mrb[8].mxu1 }
0x143d   :  { %v716_v57 = vadd.f32 %v710_v56, %v1330_v31  ;;  %v1062_v58 = vpop.f32.mrb[9].mxu1 }
0x143e   :  { %v713_v59 = vpop.f32.mrb[10].mxu1 }
0x143f   :  { %1169 = vtanh.f32 %v716_v57  ;;  %v1063_v60 = vpop.f32.mrb[11].mxu1  ;;  %v935_v62 = vmul.f32 -1.442695, %v716_v57 }
0x1441   :  { %1171 = vpow2.f32 %v935_v62 }
0x1449   :  { %v1170_v61 = vpop.eup %1169 }
0x144a   :  { %726 = vrot.lane.b32.xlu0 %v1170_v61, %s1226_s22 }
0x144b   :  { %v1172_v63 = vpop.eup %1171 }
0x144c   :  { %v720_v1 = vadd.f32 1.0, %v1172_v63 }
0x144e   :  { %1173 = vrcp.f32 %v720_v1 }
0x1458   :  { %v1174_v2 = vpop.eup %1173 }
0x1459   :  { %v724_v5 = vmul.f32 %v1174_v2, %v662_v27 }
0x14bc   :  { %v727_v3 = vpop.permute.xlu0 %726 }
0x14bd   :  { %v729_v4 = vmul.f32 %v1174_v2, %v727_v3 }
0x14bf   :  { %731 = vrot.lane.b32.xlu1 %v729_v4, %s1231_s15 }
0x1531   :  { %v732_v6 = vpop.permute.xlu1 %731 }
0x1532   :  { %v734_v31 = vadd.f32 %v732_v6, %v724_v5 }
0x1534   :  { %1175 = vtanh.f32 %v734_v31 }
0x153e   :  { %v1176_v29 = vpop.eup %1175 }
0x153f   :  { %737 = vrot.lane.b32.xlu0 %v1176_v29, %s1226_s22  ;;  %s1199_s22 = scalar_lea.vmem %s906_s21, 128 }
0x1540   :  { %p1200_p8 = scmp.ne.s32.totalorder %s906_s21, %s1199_s22  ;;  %p1205_p10 = scmp.lt.s32.totalorder %s1199_s22, %s1199_s22 }
0x1542   :  { %p1206_p11 = por %p1205_p10, %p1204_p9 }
0x1544   :  { %p1207_p12 = pnand %p1206_p11, %p1200_p8 }
0x15b1   :  { %v738_v13 = vpop.permute.xlu0 %737 }
0x15b2   :  { %v740_v14 = vmul.f32 %v1174_v2, %v738_v13 }
0x15b4   :  { %v741_v17 = vpack.c.bf16 %v740_v14, %v740_v14 }
0x15b6   :  { %747 = vrot.lane.b32.xlu1 %v741_v17, %s1231_s15 }
0x1628   :  { %v748_v21 = vpop.permute.xlu1 %747 }
0x1629   :  { %1069 = vmatmul.mubr.msk.bf16.vlgmr.msra.gmra.mrb[28].mxu0 %vm168_vm3, %v748_v21 }
0x16fc   :  { %v798_v25 = vpop.f32.mrb[28].mxu0 }
0x16fd   :  { %v799_v26 = vadd.f32 %v936_v24, %v798_v25  ;;  %v1070_v28 = vpop.f32.mrb[29].mxu0 }
0x16fe   :  { %v801_v15 = vpop.f32.mrb[30].mxu0 }
0x16ff   :  { %v804_v30 = vmax.f32 %v799_v26, 0.0  ;;  %v1071_v32 = vpop.f32.mrb[31].mxu0 }
0x1701   :  { %v805_v33 = vpack.c.bf16 %v804_v30, %v804_v30 }
0x1703   :  { %1089 = vmatmul.mubr.bf16.vlgmr.msra.gmra.mrb[12].mxu1 %v805_v33 }
0x17d6   :  { %v892_v0 = vpop.f32.mrb[12].mxu1 }
0x17d7   :  { %v893_v34 = vadd.f32 %v940_v20, %v892_v0  ;;  %v1090_v35 = vpop.f32.mrb[13].mxu1 }
0x17d8   :  { %v895_v36 = vpop.f32.mrb[14].mxu1 }
0x17d9   :  { %898 = vst [vmem:[#allocation5] sm:$0xff] %v893_v34  ;;  %v1091_v37 = vpop.f32.mrb[15].mxu1 }
0x17da   :  { %1210 = shalt.err (!%p1207_p12)
}
0x17db   :  { %s1211_s2 = scalar_lea.hbm %s1443_s3, 128 }
0x17dc   :  { %p1212_p13 = scmp.ne.s32.totalorder %s1443_s3, %s1211_s2  ;;  %p1215_p0 = scmp.lt.u32.totalorder %s1211_s2, %s1443_s3 }
0x17de   :  { %p1217_p1 = pnand %p1215_p0, %p1212_p13 }
0x17e0   :  { %1220 = shalt.err (!%p1217_p1)
}
0x17e1   :  { %908 = dma.vmem_to_hbm [thread:$0]  %s906_s21, 128, %s1443_s3, [#allocation4]  }
0x17e2   :  { %1223 = dma.done.wait [#allocation4], 128  }
0x17e3   :  { %1224 = vsyncadd [#allocation4], 4294967168 }
0x17e4   :  { %912 = vsyncpa [#allocation3], 1 }
0x17e5   :  { %913 = vsyncpa [#allocation4], 1 }

</bundles_post_ra>
